<compile_context>
chip_gen: v7x
topology: tpu7x:2x2x1
jax: 0.10.0
libtpu: 0.0.40
codegen_flags: <defaults>
</compile_context>

<pallas_src>
import jax
import jax.numpy as jnp
import numpy as np
from jax.experimental import pallas as pl
from jax.experimental.pallas import tpu as pltpu


def _simple_attention_kernel(m_ref, w_ref, pool_ref, alpha_ref):
    # m_ref:     (bB, T, D)  input block, native dtype
    # w_ref:     (1, D)      projection weight (nn.Linear(D, 1, bias=False).weight)
    # pool_ref:  (bB, 1, D)  attention-pooled output
    # alpha_ref: (bB, T, 1)  softmax weights (reshaped to (B, 1, T) in wrapper)
    m = m_ref[...].astype(jnp.float32)            # (bB, T, D)
    w = w_ref[...].astype(jnp.float32)            # (1, D), broadcasts over bB, T

    # scale[b, t] = sum_d M[t, b, d] * w[d]
    s = jnp.sum(m * w, axis=-1, keepdims=True)    # (bB, T, 1)

    # numerically-stable softmax over the sequence axis (PyTorch dim=0)
    s_max = jnp.max(s, axis=1, keepdims=True)     # (bB, 1, 1)
    e = jnp.exp(s - s_max)                        # (bB, T, 1)
    alpha = e / jnp.sum(e, axis=1, keepdims=True)

    # attn_pool[b, d] = sum_t alpha[b, t] * M[t, b, d]
    pool = jnp.sum(alpha * m, axis=1, keepdims=True)   # (bB, 1, D)

    pool_ref[...] = pool.astype(pool_ref.dtype)
    alpha_ref[...] = alpha.astype(alpha_ref.dtype)


def _largest_divisor_le(n, cap):
    for d in range(min(n, cap), 0, -1):
        if n % d == 0:
            return d
    return 1


def simple_attention(M, weight, *, block_b=None):
    """M: (T, B, D); weight: (1, D) == nn.Linear(D, 1, bias=False).weight.

    Returns (attn_pool, alpha) with shapes (B, D) and (B, 1, T).
    """
    T, B, D = M.shape
    # batch-major layout == M.transpose(0, 1) in the PyTorch forward
    m_btd = jnp.swapaxes(M, 0, 1)                 # (B, T, D)
    w = weight.reshape(1, D)

    if block_b is None:
        # A handful of batch rows per grid step amortizes the ~0.35us/step grid
        # overhead while keeping each double-buffered block tiny in VMEM
        # (block_b * T * D * 4B), so the same tiling fits v5e/v6e/v7x limits.
        block_b = _largest_divisor_le(B, 8)
    grid = (B // block_b,)

    pool, alpha = pl.pallas_call(
        _simple_attention_kernel,
        out_shape=(
            jax.ShapeDtypeStruct((B, 1, D), M.dtype),
            jax.ShapeDtypeStruct((B, T, 1), M.dtype),
        ),
        grid_spec=pltpu.PrefetchScalarGridSpec(
            num_scalar_prefetch=0,
            grid=grid,
            in_specs=[
                pl.BlockSpec((block_b, T, D), lambda i: (i, 0, 0)),
                pl.BlockSpec((1, D), lambda i: (0, 0)),
            ],
            out_specs=(
                pl.BlockSpec((block_b, 1, D), lambda i: (i, 0, 0)),
                pl.BlockSpec((block_b, T, 1), lambda i: (i, 0, 0)),
            ),
        ),
        compiler_params=pltpu.CompilerParams(
            dimension_semantics=("parallel",)),
    )(m_btd, w)

    attn_pool = pool.reshape(B, D)
    # (B, T, 1) and (B, 1, T) share the same row-major order -> free reshape.
    alpha_out = alpha.reshape(B, 1, T)
    return attn_pool, alpha_out


def _reference(M, weight):
    scale = jnp.einsum("tbd,od->tbo", M, weight)       # (T, B, 1)
    alpha = jax.nn.softmax(scale, axis=0)              # (T, B, 1)
    alpha_p = jnp.transpose(alpha, (1, 2, 0))          # (B, 1, T)
    attn_pool = jnp.einsum("bqt,btd->bqd", alpha_p,
                           jnp.swapaxes(M, 0, 1))[:, 0, :]
    return attn_pool, alpha_p


if __name__ == "__main__":
    key = jax.random.PRNGKey(0)
    k1, k2 = jax.random.split(key)

    T, B, D = 8, 2, 32      # seq=8, batch=2, hidden=32
    M = jax.random.normal(k1, (T, B, D), dtype=jnp.float32)
    weight = jax.random.normal(k2, (1, D), dtype=jnp.float32) / jnp.sqrt(D)

    attn_pool, alpha = simple_attention(M, weight)
    attn_pool = jax.block_until_ready(attn_pool)
    alpha = jax.block_until_ready(alpha)

    ref_pool, ref_alpha = _reference(M, weight)
    np.testing.assert_allclose(np.asarray(attn_pool), np.asarray(ref_pool),
                               rtol=1e-5, atol=1e-5)
    np.testing.assert_allclose(np.asarray(alpha), np.asarray(ref_alpha),
                               rtol=1e-5, atol=1e-5)

    print("KERNEL_OK")
</pallas_src>

<mosaic_0001>
module attributes {stable_mosaic.version = 11 : i64} {
  func.func @_simple_attention_kernel(%arg0: i32, %arg1: memref<2x8x32xf32, #tpu.memory_space<vmem>>, %arg2: memref<1x32xf32, #tpu.memory_space<vmem>>, %arg3: memref<2x1x32xf32, #tpu.memory_space<vmem>>, %arg4: memref<2x8x1xf32, #tpu.memory_space<vmem>>) attributes {dimension_semantics = [#tpu.dimension_semantics<parallel>], iteration_bounds = array<i64: 1>, scalar_prefetch = 0 : i64, scratch_operands = 0 : i64, tpu.core_type = #tpu.core_type<tc>, window_params = [{transform_indices = @transform_0, window_bounds = array<i64: 2, 8, 32>}, {pipeline_mode = #tpu.pipeline_mode<synchronous>, transform_indices = @transform_1, window_bounds = array<i64: 1, 32>}, {transform_indices = @transform_2, window_bounds = array<i64: 2, 1, 32>}, {transform_indices = @transform_3, window_bounds = array<i64: 2, 8, 1>}]} {
    %c0 = arith.constant 0 : index
    %c0_0 = arith.constant 0 : index
    %c0_1 = arith.constant 0 : index
    %0 = vector.load %arg1[%c0, %c0_0, %c0_1] : memref<2x8x32xf32, #tpu.memory_space<vmem>>, vector<2x8x32xf32>
    %c0_2 = arith.constant 0 : index
    %c0_3 = arith.constant 0 : index
    %1 = vector.load %arg2[%c0_2, %c0_3] : memref<1x32xf32, #tpu.memory_space<vmem>>, vector<1x32xf32>
    %2 = vector.shape_cast %1 : vector<1x32xf32> to vector<1x1x32xf32>
    %3 = vector.broadcast %2 : vector<1x1x32xf32> to vector<2x8x32xf32>
    %4 = arith.mulf %0, %3 : vector<2x8x32xf32>
    %cst = arith.constant dense<0.000000e+00> : vector<2x8xf32>
    %5 = vector.multi_reduction <add>, %4, %cst [2] : vector<2x8x32xf32> to vector<2x8xf32>
    %6 = vector.shape_cast %5 : vector<2x8xf32> to vector<2x8x1xf32>
    %cst_4 = arith.constant dense<0xFF800000> : vector<2x1xf32>
    %7 = vector.multi_reduction <maximumf>, %6, %cst_4 [1] : vector<2x8x1xf32> to vector<2x1xf32>
    %8 = vector.shape_cast %7 : vector<2x1xf32> to vector<2x1x1xf32>
    %9 = vector.broadcast %8 : vector<2x1x1xf32> to vector<2x8x1xf32>
    %10 = arith.subf %6, %9 : vector<2x8x1xf32>
    %11 = math.exp %10 : vector<2x8x1xf32>
    %cst_5 = arith.constant dense<0.000000e+00> : vector<2x1xf32>
    %12 = vector.multi_reduction <add>, %11, %cst_5 [1] : vector<2x8x1xf32> to vector<2x1xf32>
    %13 = vector.shape_cast %12 : vector<2x1xf32> to vector<2x1x1xf32>
    %14 = vector.broadcast %13 : vector<2x1x1xf32> to vector<2x8x1xf32>
    %15 = arith.divf %11, %14 : vector<2x8x1xf32>
    %16 = vector.broadcast %15 : vector<2x8x1xf32> to vector<2x8x32xf32>
    %17 = arith.mulf %16, %0 : vector<2x8x32xf32>
    %cst_6 = arith.constant dense<0.000000e+00> : vector<2x32xf32>
    %18 = vector.multi_reduction <add>, %17, %cst_6 [1] : vector<2x8x32xf32> to vector<2x32xf32>
    %19 = vector.shape_cast %18 : vector<2x32xf32> to vector<2x1x32xf32>
    %c0_7 = arith.constant 0 : index
    %c0_8 = arith.constant 0 : index
    %c0_9 = arith.constant 0 : index
    %20 = vector.load %arg3[%c0_7, %c0_8, %c0_9] : memref<2x1x32xf32, #tpu.memory_space<vmem>>, vector<2x1x32xf32>
    tpu.vector_store %arg3[%c0_7, %c0_8, %c0_9], %19 {strides = array<i32>} : memref<2x1x32xf32, #tpu.memory_space<vmem>>, vector<2x1x32xf32>,
    %c0_10 = arith.constant 0 : index
    %c0_11 = arith.constant 0 : index
    %c0_12 = arith.constant 0 : index
    %21 = vector.load %arg4[%c0_10, %c0_11, %c0_12] : memref<2x8x1xf32, #tpu.memory_space<vmem>>, vector<2x8x1xf32>
    tpu.vector_store %arg4[%c0_10, %c0_11, %c0_12], %15 {strides = array<i32>} : memref<2x8x1xf32, #tpu.memory_space<vmem>>, vector<2x8x1xf32>,
    return
  }
  func.func @transform_0(%arg0: i32) -> (i32, i32, i32) {
    %c0_i32 = arith.constant 0 : i32
    %c0_i32_0 = arith.constant 0 : i32
    %c0_i32_1 = arith.constant 0 : i32
    return %arg0, %c0_i32, %c0_i32_0 : i32, i32, i32
  }
  func.func @transform_1(%arg0: i32) -> (i32, i32) {
    %c0_i32 = arith.constant 0 : i32
    %c0_i32_0 = arith.constant 0 : i32
    %c0_i32_1 = arith.constant 0 : i32
    return %c0_i32, %c0_i32_0 : i32, i32
  }
  func.func @transform_2(%arg0: i32) -> (i32, i32, i32) {
    %c0_i32 = arith.constant 0 : i32
    %c0_i32_0 = arith.constant 0 : i32
    %c0_i32_1 = arith.constant 0 : i32
    return %arg0, %c0_i32, %c0_i32_0 : i32, i32, i32
  }
  func.func @transform_3(%arg0: i32) -> (i32, i32, i32) {
    %c0_i32 = arith.constant 0 : i32
    %c0_i32_0 = arith.constant 0 : i32
    %c0_i32_1 = arith.constant 0 : i32
    return %arg0, %c0_i32, %c0_i32_0 : i32, i32, i32
  }
}

</mosaic_0001>

<bundles_post_ra>
// kernel: tpu_custom_call.1
= control target key start
LH: loop header
LB: loop body
LE: loop exit
PB: predicated region body
PF: predicated region fallthrough
CT: control target
= control target key end

     0   :  { %9 = vsyncpa [#allocation3], 0  ;;  %s249_s0 = inlined_call_operand.hbm [shape: f32[2,8,32], index: 0, kind: input, shape index: {}]   ;;  %s250_s1 = inlined_call_operand.vmem [shape: f32[1,32], index: 1, kind: input, shape index: {}]   ;;  %s251_s2 = inlined_call_operand.hbm [shape: f32[2,1,32], index: 2, kind: output, shape index: {0}]   ;;  %s252_s3 = inlined_call_operand.vmem [shape: f32[2,8,1], index: 3, kind: output, shape index: {1}]  }
   0x1   :  { %10 = vsyncpa [#allocation4], 0  ;;  %s186_s12 = smov [#allocation2]   ;;  %s138_s16 = scalar_lea.hbm %s249_s0, 256 }
   0x2   :  { %s16_s13 = sshll.u32 %s186_s12, 4  ;;  %p139_p0 = scmp.ne.s32.totalorder %s249_s0, %s138_s16  ;;  %s17_s13 = int_to_ptr.vmem [resolvable:$true] %s16_s13 }
   0x3   :  { %p142_p1 = scmp.lt.u32.totalorder %s138_s16, %s249_s0 }
   0x5   :  { %p144_p2 = pnand %p142_p1, %p139_p0 }
   0x7   :  { %147 = shalt.err (!%p144_p2)
}
   0x8   :  { %s148_s21 = scalar_lea.vmem %s17_s13, 256  ;;  %p153_p4 = scmp.lt.s32.totalorder %s17_s13, %s17_s13 }
   0x9   :  { %p149_p3 = scmp.ne.s32.totalorder %s17_s13, %s148_s21  ;;  %p154_p5 = scmp.lt.s32.totalorder %s148_s21, %s148_s21 }
   0xb   :  { %p155_p6 = por %p154_p5, %p153_p4 }
   0xd   :  { %p156_p7 = pnand %p155_p6, %p149_p3 }
   0xf   :  { %159 = shalt.err (!%p156_p7)
}
  0x10   :  { %s187_s22 = smov 128   ;;  %s188_s23 = smov 8  }
  0x11   :  { %22 = dma.hbm_to_vmem [thread:$0]  %s249_s0, 256, %s17_s13, [#allocation3], %s187_s22, %s187_s22, %s188_s23  }
  0x12   :  { %182 = dma.done.wait [#allocation3], 256  }
  0x13   :  { %183 = vsyncadd [#allocation3], 4294967040  ;;  %v28_v0 = vld [vmem:[#allocation2] sm:$0xff]  ;;  %v123_v1 = vld [vmem:[%s250_s1] ss:$0 sm:$0xff]  ;;  %vm39_vm0 = vcmask 261120  }
  0x14   :  { %v29_v2 = vld [vmem:[#allocation2 + $0x8] sm:$0xff]  ;;  %v37_v3 = vmul.f32 %v123_v1, %v28_v0  ;;  %vm99_vm1 = vcmask 7168   ;;  %vm96_vm2 = vcmask 253952   ;;  %s189_s30 = smov [#allocation5]  }
  0x15   :  { %v38_v4 = vmul.f32 %v123_v1, %v29_v2  ;;  %s107_s4 = sshll.u32 %s189_s30, 4  ;;  %s108_s4 = int_to_ptr.vmem [resolvable:$true] %s107_s4 }
  0x16   :  { %v40_v5 = vsel %vm39_vm0, %v37_v3, 0.0  ;;  %p165_p9 = scmp.lt.s32.totalorder %s108_s4, %s108_s4 }
  0x17   :  { %41 = vadd.xlane.f32.xlu0 %v40_v5  ;;  %v43_v6 = vsel %vm39_vm0, %v38_v4, 0.0 }
  0x1b   :  { %44 = vadd.xlane.f32.xlu0 %v43_v6 }
  0xa4   :  { %v42_v7 = vpop.xlane.xlu0 %41 }
  0xa5   :  { %v46_v8 = vrot.slane %v42_v7, 4 }
  0xa7   :  { %v47_v9 = vmax.f32 %v42_v7, %v46_v8 }
  0xa8   :  { %v45_v10 = vpop.xlane.xlu0 %44 }
  0xa9   :  { %v48_v11 = vrot.slane %v47_v9, 2  ;;  %v52_v12 = vrot.slane %v45_v10, 4 }
  0xab   :  { %v49_v13 = vmax.f32 %v47_v9, %v48_v11  ;;  %v53_v14 = vmax.f32 %v45_v10, %v52_v12 }
  0xad   :  { %v50_v15 = vrot.slane %v49_v13, 1  ;;  %v54_v16 = vrot.slane %v53_v14, 2 }
  0xaf   :  { %v51_v17 = vmax.f32 %v49_v13, %v50_v15  ;;  %v55_v18 = vmax.f32 %v53_v14, %v54_v16 }
  0xb1   :  { %v58_v19 = vsub.f32 %v42_v7, %v51_v17  ;;  %v56_v20 = vrot.slane %v55_v18, 1 }
  0xb3   :  { %v60_v21 = vmul.f32 1.442695, %v58_v19  ;;  %v57_v22 = vmax.f32 %v55_v18, %v56_v20 }
  0xb5   :  { %130 = vpow2.f32 %v60_v21  ;;  %v59_v23 = vsub.f32 %v45_v10, %v57_v22 }
  0xb7   :  { %v62_v24 = vmul.f32 1.442695, %v59_v23 }
  0xb9   :  { %132 = vpow2.f32 %v62_v24 }
  0xbf   :  { %v131_v25 = vpop.eup %130 }
  0xc0   :  { %v64_v26 = vrot.slane %v131_v25, 4 }
  0xc2   :  { %v65_v27 = vadd.f32 %v131_v25, %v64_v26 }
  0xc3   :  { %v133_v28 = vpop.eup %132 }
  0xc4   :  { %v66_v29 = vrot.slane %v65_v27, 2  ;;  %v70_v30 = vrot.slane %v133_v28, 4 }
  0xc6   :  { %v67_v31 = vadd.f32 %v66_v29, %v65_v27  ;;  %v71_v32 = vadd.f32 %v133_v28, %v70_v30 }
  0xc8   :  { %v68_v33 = vrot.slane %v67_v31, 1  ;;  %v72_v34 = vrot.slane %v71_v32, 2 }
  0xca   :  { %v69_v35 = vadd.f32 %v68_v33, %v67_v31  ;;  %v73_v36 = vadd.f32 %v72_v34, %v71_v32 }
  0xcc   :  { %v74_v37 = vrot.slane %v73_v36, 1  ;;  %134 = vrcp.f32 %v69_v35 }
  0xce   :  { %v75_v38 = vadd.f32 %v74_v37, %v73_v36 }
  0xd0   :  { %136 = vrcp.f32 %v75_v38 }
  0xd6   :  { %v135_v39 = vpop.eup %134 }
  0xd7   :  { %v77_v40 = vmul.f32 %v135_v39, %v131_v25 }
  0xd9   :  { %v80_v41 = vmul.f32 %v77_v40, %v28_v0  ;;  %100 = vst.msk [vmem:[%s252_s3] sm:$0xff] %vm99_vm1, %v77_v40 }
  0xda   :  { %v137_v42 = vpop.eup %136 }
  0xdb   :  { %v79_v43 = vmul.f32 %v137_v42, %v133_v28  ;;  %v82_v44 = vsel %vm39_vm0, %v80_v41, 0.0 }
  0xdc   :  { %v83_v45 = vrot.slane %v82_v44, 4 }
  0xdd   :  { %v81_v46 = vmul.f32 %v79_v43, %v29_v2  ;;  %101 = vst.msk [vmem:[%s252_s3 + $0x8] sm:$0xff] %vm99_vm1, %v79_v43  ;;  %s160_s3 = scalar_lea.vmem %s108_s4, 32 }
  0xde   :  { %v84_v47 = vadd.f32 %v83_v45, %v82_v44  ;;  %p161_p8 = scmp.ne.s32.totalorder %s108_s4, %s160_s3  ;;  %p166_p10 = scmp.lt.s32.totalorder %s160_s3, %s160_s3 }
  0xdf   :  { %v89_v48 = vsel %vm39_vm0, %v81_v46, 0.0 }
  0xe0   :  { %v85_v49 = vrot.slane %v84_v47, 2  ;;  %v90_v50 = vrot.slane %v89_v48, 4  ;;  %p167_p11 = por %p166_p10, %p165_p9 }
  0xe2   :  { %v86_v51 = vadd.f32 %v85_v49, %v84_v47  ;;  %v91_v52 = vadd.f32 %v90_v50, %v89_v48  ;;  %p168_p12 = pnand %p167_p11, %p161_p8 }
  0xe4   :  { %v87_v53 = vrot.slane %v86_v51, 1  ;;  %v92_v54 = vrot.slane %v91_v52, 2 }
  0xe6   :  { %v88_v55 = vadd.f32 %v87_v53, %v86_v51  ;;  %v93_v56 = vadd.f32 %v92_v54, %v91_v52 }
  0xe8   :  { %v94_v57 = vrot.slane %v93_v56, 1  ;;  %97 = vst.msk [vmem:[#allocation5] sm:$0x1] %vm96_vm2, %v88_v55 }
  0xea   :  { %v95_v58 = vadd.f32 %v94_v57, %v93_v56 }
  0xec   :  { %98 = vst.msk [vmem:[#allocation5 + $0x1] sm:$0x1] %vm96_vm2, %v95_v58 }
  0xed   :  { %171 = shalt.err (!%p168_p12)
}
  0xee   :  { %s172_s7 = scalar_lea.hbm %s251_s2, 32 }
  0xef   :  { %p173_p13 = scmp.ne.s32.totalorder %s251_s2, %s172_s7  ;;  %p176_p0 = scmp.lt.u32.totalorder %s172_s7, %s251_s2 }
  0xf1   :  { %p178_p1 = pnand %p176_p0, %p173_p13 }
  0xf3   :  { %181 = shalt.err (!%p178_p1)
}
  0xf4   :  { %s190_s12 = smov 16   ;;  %s191_s13 = smov 1  }
  0xf5   :  { %113 = dma.vmem_to_hbm [thread:$0]  %s108_s4, 32, %s251_s2, [#allocation4], %s190_s12, %s190_s12, %s191_s13  }
  0xf6   :  { %184 = dma.done.wait [#allocation4], 32  }
  0xf7   :  { %185 = vsyncadd [#allocation4], 4294967264 }
  0xf8   :  { %121 = vsyncpa [#allocation3], 1 }
  0xf9   :  { %122 = vsyncpa [#allocation4], 1 }

</bundles_post_ra>
